<compile_context>
chip_gen: v7x
topology: tpu7x:2x2x1
jax: 0.10.0
libtpu: 0.0.40
codegen_flags: <defaults>
</compile_context>

<pallas_src>
import jax
import jax.numpy as jnp
from jax.experimental import pallas as pl
from jax.experimental.pallas import tpu as pltpu


def _dice_bce_kernel(logits_ref, targets_ref, out_ref,
                     acc_p, acc_t, acc_i, acc_c, acc_b):
    # logits_ref : (1, 2, TH, W) float    targets_ref : (1, TH, W) uint8
    # out_ref    : (1, 8, 128)  float32   acc_*       : (1, 1) f32 VMEM scratch
    h = pl.program_id(1)

    @pl.when(h == 0)
    def _init():
        acc_p[...] = jnp.zeros_like(acc_p)
        acc_t[...] = jnp.zeros_like(acc_t)
        acc_i[...] = jnp.zeros_like(acc_i)
        acc_c[...] = jnp.zeros_like(acc_c)
        acc_b[...] = jnp.zeros_like(acc_b)

    x0 = logits_ref[0, 0, :, :].astype(jnp.float32)   # (TH, W) class-0 logits
    x1 = logits_ref[0, 1, :, :].astype(jnp.float32)   # (TH, W) class-1 logits
    t_i32 = targets_ref[0, :, :].astype(jnp.int32)    # (TH, W) labels (255 = ignore)

    mask = t_i32 != 255
    maskf = mask.astype(jnp.float32)
    tf = jnp.where(mask, t_i32, 0).astype(jnp.float32)

    # Logit-space form of softmax(x)[:, 1] and binary_cross_entropy.
    d = x1 - x0                                  # class-1 logit margin
    e = jnp.exp(-jnp.abs(d))                     # in (0, 1]
    one_pe = 1.0 + e
    inv = pl.reciprocal(one_pe, approx=True)     # EUP vrcp
    inv = inv * (2.0 - one_pe * inv)             # one Newton step -> ~f32 accuracy
    p = jnp.where(d >= 0, inv, e * inv)          # sigmoid(d) == softmax(x)[1]
    pm = p * maskf

    # softplus(d) = log(1+exp(d)); -log(p) = softplus(-d); -log(1-p) = softplus(d)
    sp_pos = jnp.maximum(d, 0.0) + jnp.log(one_pe)
    sp_neg = sp_pos - d
    # F.binary_cross_entropy clamps each log term at -100 -> clamp softplus at 100.
    bce_elem = (tf * jnp.minimum(sp_neg, 100.0)
                + (maskf - tf) * jnp.minimum(sp_pos, 100.0))

    acc_p[...] += jnp.sum(pm)
    acc_t[...] += jnp.sum(tf)
    acc_i[...] += jnp.sum(pm * tf)
    acc_c[...] += jnp.sum(maskf)
    acc_b[...] += jnp.sum(bce_elem)

    @pl.when(h == pl.num_programs(1) - 1)
    def _flush():
        lane = jax.lax.broadcasted_iota(jnp.int32, (8, 128), 1)
        blk = (jnp.where(lane == 0, acc_p[...], 0.0)
               + jnp.where(lane == 1, acc_t[...], 0.0)
               + jnp.where(lane == 2, acc_i[...], 0.0)
               + jnp.where(lane == 3, acc_c[...], 0.0)
               + jnp.where(lane == 4, acc_b[...], 0.0))
        out_ref[0, :, :] = blk


def _choose_tile_h(H, W, itemsize):
    # Keep the per-step logits slab (2 * TH * W * itemsize) around <= 1 MiB so
    # double-buffered inputs stay far under scoped VMEM on v5e/v6e/v7x.
    budget = 1 << 20
    max_th = max(1, budget // (2 * W * itemsize))
    if H <= max_th:
        return H
    cands = [th for th in range(8, max_th + 1, 8) if H % th == 0]
    if not cands:
        # TODO(synk): pad H instead of falling back to a full-H block for exotic
        # shapes where no multiple-of-8 divisor exists and H*W is huge.
        return H
    for th in sorted(cands, reverse=True):
        if th % 32 == 0:          # friendliest second-minor size for uint8 targets
            return th
    return max(cands)


def dice_bce_loss(logits, targets, smooth=1.0):
    """logits: (N, 2, H, W) float; targets: (N, H, W) int labels (255 = ignore)."""
    N, C, H, W = logits.shape
    assert C == 2, "DiceBCELoss takes the class-1 prob of a 2-class softmax"

    if logits.dtype not in (jnp.float32, jnp.bfloat16):
        logits = logits.astype(jnp.float32)
    tg = targets.astype(jnp.uint8)               # labels are 0/1/255 -> 1 byte/elem

    th = _choose_tile_h(H, W, jnp.dtype(logits.dtype).itemsize)
    n_h = H // th
    grid = (N, n_h)

    out = pl.pallas_call(
        _dice_bce_kernel,
        out_shape=jax.ShapeDtypeStruct((N, 8, 128), jnp.float32),
        grid_spec=pltpu.PrefetchScalarGridSpec(
            num_scalar_prefetch=0,
            grid=grid,
            in_specs=[
                pl.BlockSpec((1, 2, th, W), lambda n, h: (n, 0, h, 0)),
                pl.BlockSpec((1, th, W), lambda n, h: (n, h, 0)),
            ],
            out_specs=pl.BlockSpec((1, 8, 128), lambda n, h: (n, 0, 0)),
            scratch_shapes=[pltpu.VMEM((1, 1), jnp.float32) for _ in range(5)],
        ),
        compiler_params=pltpu.CompilerParams(
            dimension_semantics=("parallel", "arbitrary"),
            vmem_limit_bytes=32 * 1024 * 1024,
        ),
    )(logits, tg)

    # Tiny epilogue: combine per-image partial sums into the scalar loss.
    parts = jnp.sum(out[:, 0, :], axis=0)
    sum_p, sum_t, inter, count, bce_sum = (parts[0], parts[1], parts[2],
                                           parts[3], parts[4])
    smooth = jnp.float32(smooth)
    bce = bce_sum / count
    dice = 1.0 - (2.0 * inter + smooth) / (sum_p + sum_t + smooth)
    return bce + dice


def _reference(logits, targets, smooth=1.0):
    # Pure-JAX reference matching the PyTorch forward.
    p = jax.nn.softmax(logits.astype(jnp.float32), axis=1)[:, 1].reshape(-1)
    t = targets.reshape(-1)
    mask = t != 255
    maskf = mask.astype(jnp.float32)
    tf = jnp.where(mask, t, 0).astype(jnp.float32)
    pm = p * maskf
    inter = jnp.sum(pm * tf)
    dice = 1.0 - (2.0 * inter + smooth) / (jnp.sum(pm) + jnp.sum(tf) + smooth)
    log_p = jnp.maximum(jnp.log(p), -100.0)
    log_1mp = jnp.maximum(jnp.log(1.0 - p), -100.0)
    bce = jnp.sum(maskf * -(tf * log_p + (1.0 - tf) * log_1mp)) / jnp.sum(maskf)
    return bce + dice


if __name__ == "__main__":
    key = jax.random.PRNGKey(0)
    k1, k2 = jax.random.split(key)

    N, C, H, W = 2, 2, 16, 16
    logits = jax.random.normal(k1, (N, C, H, W), dtype=jnp.float32)
    # Labels in {0, 1}, with some positions marked ignore (255).
    raw = jax.random.randint(k2, (N, H, W), 0, 5)
    targets = jnp.where(raw == 4, 255, raw % 2).astype(jnp.int32)

    loss = dice_bce_loss(logits, targets, smooth=1.0)
    loss = jax.block_until_ready(loss)

    ref = _reference(logits, targets, smooth=1.0)
    assert jnp.isfinite(loss), "non-finite loss"
    assert jnp.allclose(loss, ref, rtol=1e-4, atol=1e-5), (loss, ref)

    print("KERNEL_OK")
</pallas_src>

<mosaic_0001>
module attributes {stable_mosaic.version = 11 : i64} {
  func.func @_dice_bce_kernel(%arg0: i32, %arg1: i32, %arg2: memref<1x2x16x16xf32, #tpu.memory_space<vmem>>, %arg3: memref<1x16x16xi8, #tpu.memory_space<vmem>>, %arg4: memref<1x8x128xf32, #tpu.memory_space<vmem>>, %arg5: memref<1x1xf32, #tpu.memory_space<vmem>>, %arg6: memref<1x1xf32, #tpu.memory_space<vmem>>, %arg7: memref<1x1xf32, #tpu.memory_space<vmem>>, %arg8: memref<1x1xf32, #tpu.memory_space<vmem>>, %arg9: memref<1x1xf32, #tpu.memory_space<vmem>>) attributes {dimension_semantics = [#tpu.dimension_semantics<parallel>, #tpu.dimension_semantics<arbitrary>], iteration_bounds = array<i64: 2, 1>, scalar_prefetch = 0 : i64, scratch_operands = 5 : i64, tpu.core_type = #tpu.core_type<tc>, window_params = [{transform_indices = @transform_0, window_bounds = array<i64: 1, 2, 16, 16>}, {transform_indices = @transform_1, window_bounds = array<i64: 1, 16, 16>}, {transform_indices = @transform_2, window_bounds = array<i64: 1, 8, 128>}]} {
    %c0_i32 = arith.constant 0 : i32
    %0 = arith.cmpi eq, %arg1, %c0_i32 : i32
    %1 = arith.extui %0 : i1 to i32
    %c0_i32_0 = arith.constant 0 : i32
    %2 = arith.cmpi ne, %1, %c0_i32_0 : i32
    scf.if %2 {
      %cst_44 = arith.constant 0.000000e+00 : f32
      %91 = vector.broadcast %cst_44 : f32 to vector<1x1xf32>
      %c0_45 = arith.constant 0 : index
      %c0_46 = arith.constant 0 : index
      %92 = vector.load %arg5[%c0_45, %c0_46] : memref<1x1xf32, #tpu.memory_space<vmem>>, vector<1x1xf32>
      tpu.vector_store %arg5[%c0_45, %c0_46], %91 {strides = array<i32>} : memref<1x1xf32, #tpu.memory_space<vmem>>, vector<1x1xf32>,
      %cst_47 = arith.constant 0.000000e+00 : f32
      %93 = vector.broadcast %cst_47 : f32 to vector<1x1xf32>
      %c0_48 = arith.constant 0 : index
      %c0_49 = arith.constant 0 : index
      %94 = vector.load %arg6[%c0_48, %c0_49] : memref<1x1xf32, #tpu.memory_space<vmem>>, vector<1x1xf32>
      tpu.vector_store %arg6[%c0_48, %c0_49], %93 {strides = array<i32>} : memref<1x1xf32, #tpu.memory_space<vmem>>, vector<1x1xf32>,
      %cst_50 = arith.constant 0.000000e+00 : f32
      %95 = vector.broadcast %cst_50 : f32 to vector<1x1xf32>
      %c0_51 = arith.constant 0 : index
      %c0_52 = arith.constant 0 : index
      %96 = vector.load %arg7[%c0_51, %c0_52] : memref<1x1xf32, #tpu.memory_space<vmem>>, vector<1x1xf32>
      tpu.vector_store %arg7[%c0_51, %c0_52], %95 {strides = array<i32>} : memref<1x1xf32, #tpu.memory_space<vmem>>, vector<1x1xf32>,
      %cst_53 = arith.constant 0.000000e+00 : f32
      %97 = vector.broadcast %cst_53 : f32 to vector<1x1xf32>
      %c0_54 = arith.constant 0 : index
      %c0_55 = arith.constant 0 : index
      %98 = vector.load %arg8[%c0_54, %c0_55] : memref<1x1xf32, #tpu.memory_space<vmem>>, vector<1x1xf32>
      tpu.vector_store %arg8[%c0_54, %c0_55], %97 {strides = array<i32>} : memref<1x1xf32, #tpu.memory_space<vmem>>, vector<1x1xf32>,
      %cst_56 = arith.constant 0.000000e+00 : f32
      %99 = vector.broadcast %cst_56 : f32 to vector<1x1xf32>
      %c0_57 = arith.constant 0 : index
      %c0_58 = arith.constant 0 : index
      %100 = vector.load %arg9[%c0_57, %c0_58] : memref<1x1xf32, #tpu.memory_space<vmem>>, vector<1x1xf32>
      tpu.vector_store %arg9[%c0_57, %c0_58], %99 {strides = array<i32>} : memref<1x1xf32, #tpu.memory_space<vmem>>, vector<1x1xf32>,
    } else {
    }
    %c0 = arith.constant 0 : index
    %c0_1 = arith.constant 0 : index
    %c0_2 = arith.constant 0 : index
    %c0_3 = arith.constant 0 : index
    %3 = vector.load %arg2[%c0, %c0_1, %c0_2, %c0_3] : memref<1x2x16x16xf32, #tpu.memory_space<vmem>>, vector<1x1x16x16xf32>
    %4 = vector.shape_cast %3 : vector<1x1x16x16xf32> to vector<16x16xf32>
    %c0_4 = arith.constant 0 : index
    %c1 = arith.constant 1 : index
    %c0_5 = arith.constant 0 : index
    %c0_6 = arith.constant 0 : index
    %5 = vector.load %arg2[%c0_4, %c1, %c0_5, %c0_6] : memref<1x2x16x16xf32, #tpu.memory_space<vmem>>, vector<1x1x16x16xf32>
    %6 = vector.shape_cast %5 : vector<1x1x16x16xf32> to vector<16x16xf32>
    %c0_7 = arith.constant 0 : index
    %c0_8 = arith.constant 0 : index
    %c0_9 = arith.constant 0 : index
    %7 = vector.load %arg3[%c0_7, %c0_8, %c0_9] : memref<1x16x16xi8, #tpu.memory_space<vmem>>, vector<1x16x16xi8>
    %8 = vector.shape_cast %7 : vector<1x16x16xi8> to vector<16x16xi8>
    %9 = arith.extui %8 : vector<16x16xi8> to vector<16x16xi32>
    %c255_i32 = arith.constant 255 : i32
    %10 = vector.broadcast %c255_i32 : i32 to vector<16x16xi32>
    %11 = arith.cmpi ne, %9, %10 : vector<16x16xi32>
    %12 = arith.extui %11 : vector<16x16xi1> to vector<16x16xi32>
    %13 = arith.sitofp %12 : vector<16x16xi32> to vector<16x16xf32>
    %c0_i32_10 = arith.constant 0 : i32
    %14 = vector.broadcast %c0_i32_10 : i32 to vector<16x16xi32>
    %15 = arith.select %11, %9, %14 : vector<16x16xi1>, vector<16x16xi32>
    %16 = arith.sitofp %15 : vector<16x16xi32> to vector<16x16xf32>
    %17 = arith.subf %6, %4 : vector<16x16xf32>
    %18 = math.absf %17 : vector<16x16xf32>
    %cst = arith.constant 0.000000e+00 : f32
    %19 = vector.broadcast %cst : f32 to vector<16x16xf32>
    %20 = arith.subf %19, %18 : vector<16x16xf32>
    %21 = math.exp %20 : vector<16x16xf32>
    %cst_11 = arith.constant 1.000000e+00 : f32
    %22 = vector.broadcast %cst_11 : f32 to vector<16x16xf32>
    %23 = arith.addf %22, %21 : vector<16x16xf32>
    %24 = tpu.reciprocal %23 {approx = true} : vector<16x16xf32> -> vector<16x16xf32>
    %25 = arith.mulf %23, %24 : vector<16x16xf32>
    %cst_12 = arith.constant 2.000000e+00 : f32
    %26 = vector.broadcast %cst_12 : f32 to vector<16x16xf32>
    %27 = arith.subf %26, %25 : vector<16x16xf32>
    %28 = arith.mulf %24, %27 : vector<16x16xf32>
    %cst_13 = arith.constant 0.000000e+00 : f32
    %29 = vector.broadcast %cst_13 : f32 to vector<16x16xf32>
    %30 = arith.cmpf oge, %17, %29 : vector<16x16xf32>
    %31 = arith.mulf %21, %28 : vector<16x16xf32>
    %32 = arith.select %30, %28, %31 : vector<16x16xi1>, vector<16x16xf32>
    %33 = arith.mulf %32, %13 : vector<16x16xf32>
    %cst_14 = arith.constant 0.000000e+00 : f32
    %34 = vector.broadcast %cst_14 : f32 to vector<16x16xf32>
    %35 = arith.maximumf %17, %34 : vector<16x16xf32>
    %36 = math.log %23 : vector<16x16xf32>
    %37 = arith.addf %35, %36 : vector<16x16xf32>
    %38 = arith.subf %37, %17 : vector<16x16xf32>
    %cst_15 = arith.constant 1.000000e+02 : f32
    %39 = vector.broadcast %cst_15 : f32 to vector<16x16xf32>
    %40 = arith.minimumf %38, %39 : vector<16x16xf32>
    %41 = arith.mulf %16, %40 : vector<16x16xf32>
    %42 = arith.subf %13, %16 : vector<16x16xf32>
    %cst_16 = arith.constant 1.000000e+02 : f32
    %43 = vector.broadcast %cst_16 : f32 to vector<16x16xf32>
    %44 = arith.minimumf %37, %43 : vector<16x16xf32>
    %45 = arith.mulf %42, %44 : vector<16x16xf32>
    %46 = arith.addf %41, %45 : vector<16x16xf32>
    %c0_17 = arith.constant 0 : index
    %c0_18 = arith.constant 0 : index
    %47 = vector.load %arg5[%c0_17, %c0_18] : memref<1x1xf32, #tpu.memory_space<vmem>>, vector<1x1xf32>
    %48 = vector.shape_cast %33 : vector<16x16xf32> to vector<1x16x16xf32>
    %cst_19 = arith.constant dense<0.000000e+00> : vector<1xf32>
    %49 = vector.multi_reduction <add>, %48, %cst_19 [1, 2] : vector<1x16x16xf32> to vector<1xf32>
    %50 = vector.shape_cast %49 : vector<1xf32> to vector<1x1x1xf32>
    %51 = vector.extract %50[0, 0, 0] : f32 from vector<1x1x1xf32>
    %52 = vector.broadcast %51 : f32 to vector<1x1xf32>
    %53 = arith.addf %47, %52 : vector<1x1xf32>
    %c0_20 = arith.constant 0 : index
    %c0_21 = arith.constant 0 : index
    %54 = vector.load %arg5[%c0_20, %c0_21] : memref<1x1xf32, #tpu.memory_space<vmem>>, vector<1x1xf32>
    tpu.vector_store %arg5[%c0_20, %c0_21], %53 {strides = array<i32>} : memref<1x1xf32, #tpu.memory_space<vmem>>, vector<1x1xf32>,
    %c0_22 = arith.constant 0 : index
    %c0_23 = arith.constant 0 : index
    %55 = vector.load %arg6[%c0_22, %c0_23] : memref<1x1xf32, #tpu.memory_space<vmem>>, vector<1x1xf32>
    %56 = vector.shape_cast %16 : vector<16x16xf32> to vector<1x16x16xf32>
    %cst_24 = arith.constant dense<0.000000e+00> : vector<1xf32>
    %57 = vector.multi_reduction <add>, %56, %cst_24 [1, 2] : vector<1x16x16xf32> to vector<1xf32>
    %58 = vector.shape_cast %57 : vector<1xf32> to vector<1x1x1xf32>
    %59 = vector.extract %58[0, 0, 0] : f32 from vector<1x1x1xf32>
    %60 = vector.broadcast %59 : f32 to vector<1x1xf32>
    %61 = arith.addf %55, %60 : vector<1x1xf32>
    %c0_25 = arith.constant 0 : index
    %c0_26 = arith.constant 0 : index
    %62 = vector.load %arg6[%c0_25, %c0_26] : memref<1x1xf32, #tpu.memory_space<vmem>>, vector<1x1xf32>
    tpu.vector_store %arg6[%c0_25, %c0_26], %61 {strides = array<i32>} : memref<1x1xf32, #tpu.memory_space<vmem>>, vector<1x1xf32>,
    %c0_27 = arith.constant 0 : index
    %c0_28 = arith.constant 0 : index
    %63 = vector.load %arg7[%c0_27, %c0_28] : memref<1x1xf32, #tpu.memory_space<vmem>>, vector<1x1xf32>
    %64 = arith.mulf %33, %16 : vector<16x16xf32>
    %65 = vector.shape_cast %64 : vector<16x16xf32> to vector<1x16x16xf32>
    %cst_29 = arith.constant dense<0.000000e+00> : vector<1xf32>
    %66 = vector.multi_reduction <add>, %65, %cst_29 [1, 2] : vector<1x16x16xf32> to vector<1xf32>
    %67 = vector.shape_cast %66 : vector<1xf32> to vector<1x1x1xf32>
    %68 = vector.extract %67[0, 0, 0] : f32 from vector<1x1x1xf32>
    %69 = vector.broadcast %68 : f32 to vector<1x1xf32>
    %70 = arith.addf %63, %69 : vector<1x1xf32>
    %c0_30 = arith.constant 0 : index
    %c0_31 = arith.constant 0 : index
    %71 = vector.load %arg7[%c0_30, %c0_31] : memref<1x1xf32, #tpu.memory_space<vmem>>, vector<1x1xf32>
    tpu.vector_store %arg7[%c0_30, %c0_31], %70 {strides = array<i32>} : memref<1x1xf32, #tpu.memory_space<vmem>>, vector<1x1xf32>,
    %c0_32 = arith.constant 0 : index
    %c0_33 = arith.constant 0 : index
    %72 = vector.load %arg8[%c0_32, %c0_33] : memref<1x1xf32, #tpu.memory_space<vmem>>, vector<1x1xf32>
    %73 = vector.shape_cast %13 : vector<16x16xf32> to vector<1x16x16xf32>
    %cst_34 = arith.constant dense<0.000000e+00> : vector<1xf32>
    %74 = vector.multi_reduction <add>, %73, %cst_34 [1, 2] : vector<1x16x16xf32> to vector<1xf32>
    %75 = vector.shape_cast %74 : vector<1xf32> to vector<1x1x1xf32>
    %76 = vector.extract %75[0, 0, 0] : f32 from vector<1x1x1xf32>
    %77 = vector.broadcast %76 : f32 to vector<1x1xf32>
    %78 = arith.addf %72, %77 : vector<1x1xf32>
    %c0_35 = arith.constant 0 : index
    %c0_36 = arith.constant 0 : index
    %79 = vector.load %arg8[%c0_35, %c0_36] : memref<1x1xf32, #tpu.memory_space<vmem>>, vector<1x1xf32>
    tpu.vector_store %arg8[%c0_35, %c0_36], %78 {strides = array<i32>} : memref<1x1xf32, #tpu.memory_space<vmem>>, vector<1x1xf32>,
    %c0_37 = arith.constant 0 : index
    %c0_38 = arith.constant 0 : index
    %80 = vector.load %arg9[%c0_37, %c0_38] : memref<1x1xf32, #tpu.memory_space<vmem>>, vector<1x1xf32>
    %81 = vector.shape_cast %46 : vector<16x16xf32> to vector<1x16x16xf32>
    %cst_39 = arith.constant dense<0.000000e+00> : vector<1xf32>
    %82 = vector.multi_reduction <add>, %81, %cst_39 [1, 2] : vector<1x16x16xf32> to vector<1xf32>
    %83 = vector.shape_cast %82 : vector<1xf32> to vector<1x1x1xf32>
    %84 = vector.extract %83[0, 0, 0] : f32 from vector<1x1x1xf32>
    %85 = vector.broadcast %84 : f32 to vector<1x1xf32>
    %86 = arith.addf %80, %85 : vector<1x1xf32>
    %c0_40 = arith.constant 0 : index
    %c0_41 = arith.constant 0 : index
    %87 = vector.load %arg9[%c0_40, %c0_41] : memref<1x1xf32, #tpu.memory_space<vmem>>, vector<1x1xf32>
    tpu.vector_store %arg9[%c0_40, %c0_41], %86 {strides = array<i32>} : memref<1x1xf32, #tpu.memory_space<vmem>>, vector<1x1xf32>,
    %c0_i32_42 = arith.constant 0 : i32
    %88 = arith.cmpi eq, %arg1, %c0_i32_42 : i32
    %89 = arith.extui %88 : i1 to i32
    %c0_i32_43 = arith.constant 0 : i32
    %90 = arith.cmpi ne, %89, %c0_i32_43 : i32
    scf.if %90 {
      %91 = tpu.iota {dimensions = array<i32: 1>} : vector<8x128xi32>
      %c0_i32_44 = arith.constant 0 : i32
      %92 = vector.broadcast %c0_i32_44 : i32 to vector<8x128xi32>
      %93 = arith.cmpi eq, %91, %92 : vector<8x128xi32>
      %c0_45 = arith.constant 0 : index
      %c0_46 = arith.constant 0 : index
      %94 = vector.load %arg5[%c0_45, %c0_46] : memref<1x1xf32, #tpu.memory_space<vmem>>, vector<1x1xf32>
      %cst_47 = arith.constant 0.000000e+00 : f32
      %95 = vector.shape_cast %94 : vector<1x1xf32> to vector<1x1xf32>
      %96 = vector.broadcast %95 : vector<1x1xf32> to vector<8x128xf32>
      %97 = vector.broadcast %cst_47 : f32 to vector<8x128xf32>
      %98 = arith.select %93, %96, %97 : vector<8x128xi1>, vector<8x128xf32>
      %c1_i32 = arith.constant 1 : i32
      %99 = vector.broadcast %c1_i32 : i32 to vector<8x128xi32>
      %100 = arith.cmpi eq, %91, %99 : vector<8x128xi32>
      %c0_48 = arith.constant 0 : index
      %c0_49 = arith.constant 0 : index
      %101 = vector.load %arg6[%c0_48, %c0_49] : memref<1x1xf32, #tpu.memory_space<vmem>>, vector<1x1xf32>
      %cst_50 = arith.constant 0.000000e+00 : f32
      %102 = vector.shape_cast %101 : vector<1x1xf32> to vector<1x1xf32>
      %103 = vector.broadcast %102 : vector<1x1xf32> to vector<8x128xf32>
      %104 = vector.broadcast %cst_50 : f32 to vector<8x128xf32>
      %105 = arith.select %100, %103, %104 : vector<8x128xi1>, vector<8x128xf32>
      %106 = arith.addf %98, %105 : vector<8x128xf32>
      %c2_i32 = arith.constant 2 : i32
      %107 = vector.broadcast %c2_i32 : i32 to vector<8x128xi32>
      %108 = arith.cmpi eq, %91, %107 : vector<8x128xi32>
      %c0_51 = arith.constant 0 : index
      %c0_52 = arith.constant 0 : index
      %109 = vector.load %arg7[%c0_51, %c0_52] : memref<1x1xf32, #tpu.memory_space<vmem>>, vector<1x1xf32>
      %cst_53 = arith.constant 0.000000e+00 : f32
      %110 = vector.shape_cast %109 : vector<1x1xf32> to vector<1x1xf32>
      %111 = vector.broadcast %110 : vector<1x1xf32> to vector<8x128xf32>
      %112 = vector.broadcast %cst_53 : f32 to vector<8x128xf32>
      %113 = arith.select %108, %111, %112 : vector<8x128xi1>, vector<8x128xf32>
      %114 = arith.addf %106, %113 : vector<8x128xf32>
      %c3_i32 = arith.constant 3 : i32
      %115 = vector.broadcast %c3_i32 : i32 to vector<8x128xi32>
      %116 = arith.cmpi eq, %91, %115 : vector<8x128xi32>
      %c0_54 = arith.constant 0 : index
      %c0_55 = arith.constant 0 : index
      %117 = vector.load %arg8[%c0_54, %c0_55] : memref<1x1xf32, #tpu.memory_space<vmem>>, vector<1x1xf32>
      %cst_56 = arith.constant 0.000000e+00 : f32
      %118 = vector.shape_cast %117 : vector<1x1xf32> to vector<1x1xf32>
      %119 = vector.broadcast %118 : vector<1x1xf32> to vector<8x128xf32>
      %120 = vector.broadcast %cst_56 : f32 to vector<8x128xf32>
      %121 = arith.select %116, %119, %120 : vector<8x128xi1>, vector<8x128xf32>
      %122 = arith.addf %114, %121 : vector<8x128xf32>
      %c4_i32 = arith.constant 4 : i32
      %123 = vector.broadcast %c4_i32 : i32 to vector<8x128xi32>
      %124 = arith.cmpi eq, %91, %123 : vector<8x128xi32>
      %c0_57 = arith.constant 0 : index
      %c0_58 = arith.constant 0 : index
      %125 = vector.load %arg9[%c0_57, %c0_58] : memref<1x1xf32, #tpu.memory_space<vmem>>, vector<1x1xf32>
      %cst_59 = arith.constant 0.000000e+00 : f32
      %126 = vector.shape_cast %125 : vector<1x1xf32> to vector<1x1xf32>
      %127 = vector.broadcast %126 : vector<1x1xf32> to vector<8x128xf32>
      %128 = vector.broadcast %cst_59 : f32 to vector<8x128xf32>
      %129 = arith.select %124, %127, %128 : vector<8x128xi1>, vector<8x128xf32>
      %130 = arith.addf %122, %129 : vector<8x128xf32>
      %c0_60 = arith.constant 0 : index
      %c0_61 = arith.constant 0 : index
      %c0_62 = arith.constant 0 : index
      %131 = vector.load %arg4[%c0_60, %c0_61, %c0_62] : memref<1x8x128xf32, #tpu.memory_space<vmem>>, vector<1x8x128xf32>
      %132 = vector.shape_cast %131 : vector<1x8x128xf32> to vector<8x128xf32>
      %133 = vector.shape_cast %130 : vector<8x128xf32> to vector<1x8x128xf32>
      tpu.vector_store %arg4[%c0_60, %c0_61, %c0_62], %133 {strides = array<i32>} : memref<1x8x128xf32, #tpu.memory_space<vmem>>, vector<1x8x128xf32>,
    } else {
    }
    return
  }
  func.func @transform_0(%arg0: i32, %arg1: i32) -> (i32, i32, i32, i32) {
    %c0_i32 = arith.constant 0 : i32
    %c0_i32_0 = arith.constant 0 : i32
    %c0_i32_1 = arith.constant 0 : i32
    return %arg0, %c0_i32, %arg1, %c0_i32_0 : i32, i32, i32, i32
  }
  func.func @transform_1(%arg0: i32, %arg1: i32) -> (i32, i32, i32) {
    %c0_i32 = arith.constant 0 : i32
    %c0_i32_0 = arith.constant 0 : i32
    return %arg0, %arg1, %c0_i32 : i32, i32, i32
  }
  func.func @transform_2(%arg0: i32, %arg1: i32) -> (i32, i32, i32) {
    %c0_i32 = arith.constant 0 : i32
    %c0_i32_0 = arith.constant 0 : i32
    %c0_i32_1 = arith.constant 0 : i32
    return %arg0, %c0_i32, %c0_i32_0 : i32, i32, i32
  }
}

</mosaic_0001>

<bundles_post_ra>
// kernel: tpu_custom_call.1
= control target key start
LH: loop header
LB: loop body
LE: loop exit
PB: predicated region body
PF: predicated region fallthrough
CT: control target
= control target key end

     0   :  { %7 = vsyncpa [#allocation8], 0  ;;  %s1147_s0 = inlined_call_operand.hbm [shape: f32[2,2,16,16], index: 0, kind: input, shape index: {}]   ;;  %s1148_s1 = inlined_call_operand.hbm [shape: u8[2,16,16], index: 1, kind: input, shape index: {}]   ;;  %s1149_s2 = inlined_call_operand.hbm [shape: f32[2,8,128], index: 2, kind: output, shape index: {}]  }
   0x1   :  { %9 = vsyncpa [#allocation8 + $0x1], 0 }
   0x2   :  { %10 = vsyncpa [#allocation11], 0 }
   0x3   :  { %12 = vsyncpa [#allocation11 + $0x1], 0 }
   0x4   :  { %13 = vsyncpa [#allocation9], 0 }
   0x5   :  { %15 = vsyncpa [#allocation9 + $0x1], 0  ;;  %s886_s9 = smov 0   ;;  %s888_s10 = smov 0  }
   0x6   :  { %s890_s11 = smov 0   ;;  %s892_s12 = smov 0  }
   0x7   :  { %s894_s13 = smov 0   ;;  %s896_s14 = smov 0  }
   0x8 LB: > { %s580_s15 = sadd.s32 4294967295, %s860_s14   ;;  %s581_s16 = sadd.s32 4294967294, %s860_s14   ;;  %s860_s14 = sphi %s896_s14, %s21_s14   ;;  %s856_s13 = sphi %s894_s13, %s1167_s13   ;;  %s852_s12 = sphi %s892_s12, %s1166_s12   ;;  %s848_s11 = sphi %s890_s11, %s1165_s11   ;;  %s844_s10 = sphi %s888_s10, %s1164_s10   ;;  %s840_s9 = sphi %s886_s9, %s1163_s9  }
   0x9   : > { %s33_s17 = sadd.s32 1, %s856_s13  ;;  %s42_s18 = sadd.s32 1, %s848_s11 }
   0xa   : > { %p35_p0 = scmp.ge.s32.totalorder %s33_s17, 2  ;;  %p49_p1 = scmp.ne.s32.totalorder %s848_s11, %s844_s10 }
   0xb   : > { %p50_p2 = scmp.eq.s32.totalorder %s860_s14, 0  ;;  %p55_p3 = scmp.ne.s32.totalorder %s844_s10, %s840_s9 }
   0xc   : > { %s1169_s17 = smov (%p35_p0, %s33_s17), 0  ;;  %p56_p5 = scmp.eq.s32.totalorder %s580_s15, 0 }
   0xd   : > { %p927_p4 = por %p50_p2, %p49_p1  ;;  %s37_s20 = ssub.s32 %s856_s13, %s1169_s17 }
   0xe   : > { %p107_p6 = scmp.eq.s32.totalorder %s580_s15, 1  ;;  %p40_p7 = scmp.eq.s32.totalorder %s37_s20, 0 }
   0xf   : > { %p933_p8 = por %p56_p5, %p55_p3  ;;  %p113_p10 = scmp.eq.s32.totalorder %s581_s16, 1 }
  0x10   : > { %p937_p9 = por %p107_p6, %p49_p1  ;;  %p644_p13 = scmp.lt.s32.totalorder %s860_s14, 2 }
  0x11   : > { %s1153_s21 = scalar_select %p933_p8, 1, 0 }
  0x12   : > { %s1154_s22 = scalar_select %p937_p9, 1, 0 }
  0x13   : > { %s942_s23 = scalar_select %p40_p7, %s848_s11, %s42_s18  }
  0x14   : > { %p944_p11 = por %p113_p10, %p55_p3  ;;  %s951_s25 = sand.u32 1, %s848_s11  }
  0x15   : > { %s584_s26 = sshll.u32 %s951_s25, 5  ;;  %s611_s27 = sshll.u32 %s856_s13, 9 }
  0x16   : > { %s1155_s24 = scalar_select %p944_p11, 1, 0 }
  0x17   : > { %s958_s30 = scalar_lea.hbm %s1147_s0, %s611_s27  ;;  %s137_s3 = scalar_lea.vmem [#allocation7], %s584_s26 }
  0x18   : > { %s146_s4 = sshll.u32 %s137_s3, 4  ;;  %p964_p0 = pnand %p644_p13, %p927_p4  ;;  %s960_s4 = int_to_ptr.vmem [resolvable:$true] %s146_s4 }
  0x19   : > { %s134_s6 = scalar_lea.sflag [#allocation8], %s951_s25  ;;  %s714_s7 = scalar_lea.hbm %s958_s30, 512 }
  0x1a   : > { %p715_p2 = scmp.ne.s32.totalorder %s958_s30, %s714_s7  ;;  %p716_p3 = pneg %p964_p0 }
  0x1b   : > { %s719_s16 = scalar_lea.hbm %s1147_s0, 1024  ;;  %p720_p4 = scmp.lt.u32.totalorder %s958_s30, %s1147_s0 }
  0x1c   : > { %p717_p5 = pnand %p716_p3, %p715_p2  ;;  %p721_p7 = scmp.lt.u32.totalorder %s719_s16, %s714_s7 }
  0x1d   : > { %p723_p13 = scmp.lt.u32.totalorder %s714_s7, %s958_s30 }
  0x1e   : > { %p718_p6 = pneg %p717_p5  ;;  %p722_p10 = por %p721_p7, %p720_p4 }
  0x20   : > { %p724_p12 = por %p723_p13, %p722_p10 }
  0x22   : > { %p725_p1 = pnand %p724_p12, %p718_p6 }
  0x24   : > { %728 = shalt.err (!%p725_p1)
}
  0x25   : > { %s729_s20 = scalar_lea.vmem %s960_s4, 512  ;;  %s862_s26 = smov [#allocation7]  }
  0x26   : > { %p730_p2 = scmp.ne.s32.totalorder %s960_s4, %s729_s20  ;;  %s734_s27 = sshll.u32 %s862_s26, 4  ;;  %s735_s27 = int_to_ptr.vmem [resolvable:$false] %s734_s27 }
  0x27   : > { %s736_s28 = scalar_lea.vmem %s735_s27, 1024  ;;  %p737_p9 = scmp.lt.s32.totalorder %s960_s4, %s735_s27 }
  0x28   : > { %p732_p5 = pnand %p730_p2, %p716_p3  ;;  %p738_p4 = scmp.lt.s32.totalorder %s736_s28, %s729_s20 }
  0x2a   : > { %p733_p11 = pneg %p732_p5  ;;  %p739_p7 = por %p738_p4, %p737_p9 }
  0x2c   : > { %p740_p10 = pnand %p739_p7, %p733_p11 }
  0x2e   : > { %743 = shalt.err (!%p740_p10)
}
  0x2f   : > { %s863_s29 = smov 128   ;;  %s864_s3 = smov 8  }
  0x30   : > { %636 = dma.hbm_to_vmem [thread:$0]  (!%p964_p0), %s958_s30, 512, %s960_s4, %s134_s6, %s863_s29, %s863_s29, %s864_s3  }
  0x31   : > { %p177_p12 = scmp.lt.s32.totalorder %s860_s14, 3  ;;  %s587_s7 = sshll.u32 %s951_s25, 2 }
  0x32   : > { %s612_s8 = sshll.u32 %s856_s13, 6  ;;  %p1157_p9 = scmp.ge.s32.totalorder %s860_s14, 1 }
  0x33   : > { %s1009_s19 = scalar_lea.hbm %s1148_s1, %s612_s8  ;;  %s160_s20 = scalar_lea.vmem [#allocation10], %s587_s7 }
  0x34   : > { %p1002_p11 = pnand %p1157_p9, %p177_p12  ;;  %s169_s26 = sshll.u32 %s160_s20, 4  ;;  %s1011_s26 = int_to_ptr.vmem [resolvable:$true] %s169_s26 }
  0x35   : > { %s157_s30 = scalar_lea.sflag [#allocation11], %s951_s25  ;;  %s744_s4 = scalar_lea.hbm %s1009_s19, 64 }
  0x36   : > { %p745_p1 = scmp.ne.s32.totalorder %s1009_s19, %s744_s4  ;;  %s749_s28 = scalar_lea.hbm %s1148_s1, 128 }
  0x37   : > { %p750_p2 = scmp.lt.u32.totalorder %s1009_s19, %s1148_s1  ;;  %p751_p5 = scmp.lt.u32.totalorder %s749_s28, %s744_s4 }
  0x38   : > { %p747_p6 = pnand %p745_p1, %p716_p3  ;;  %p753_p7 = scmp.lt.u32.totalorder %s744_s4, %s1009_s19 }
  0x39   : > { %p752_p4 = por %p751_p5, %p750_p2 }
  0x3a   : > { %p748_p13 = pneg %p747_p6 }
  0x3b   : > { %p754_p10 = por %p753_p7, %p752_p4 }
  0x3d   : > { %p755_p12 = pnand %p754_p10, %p748_p13 }
  0x3f   : > { %758 = shalt.err (!%p755_p12)
}
  0x40   : > { %s759_s7 = scalar_lea.vmem %s1011_s26, 64  ;;  %s865_s8 = smov [#allocation10]  }
  0x41   : > { %p760_p9 = scmp.ne.s32.totalorder %s1011_s26, %s759_s7  ;;  %s764_s16 = sshll.u32 %s865_s8, 4  ;;  %s765_s16 = int_to_ptr.vmem [resolvable:$false] %s764_s16 }
  0x42   : > { %s766_s18 = scalar_lea.vmem %s765_s16, 128  ;;  %p767_p8 = scmp.lt.s32.totalorder %s1011_s26, %s765_s16 }
  0x43   : > { %p762_p1 = pnand %p760_p9, %p716_p3  ;;  %p768_p2 = scmp.lt.s32.totalorder %s766_s18, %s759_s7 }
  0x45   : > { %p763_p6 = pneg %p762_p1  ;;  %p769_p5 = por %p768_p2, %p767_p8 }
  0x47   : > { %p770_p4 = pnand %p769_p5, %p763_p6 }
  0x49   : > { %773 = shalt.err (!%p770_p4)
}
  0x4a   : > { %s866_s20 = smov 32   ;;  %s867_s4 = smov 2  }
  0x4b   : > { %639 = dma.hbm_to_vmem [thread:$0]  (!%p964_p0), %s1009_s19, 64, %s1011_s26, %s157_s30, %s866_s20, %s866_s20, %s867_s4  }
  0x4c   : > { %181 = sbr.rel (%p1002_p11) target bundleno = 509 (0x1fd), region = 28  ;;  %s1042_s6 = sand.u32 (!%p1002_p11), 1, %s844_s10  }
  0x4d   : > { %s591_s27 = sshll.u32 (!%p1002_p11), %s1042_s6, 5  ;;  %s184_s28 = scalar_lea.sflag (!%p1002_p11), [#allocation8], %s1042_s6 }
  0x4e   : > { %s187_s29 = scalar_lea.vmem (!%p1002_p11), [#allocation7], %s591_s27  ;;  %p1159_p8 = scmp.ne.s32.totalorder (!%p1002_p11), %s1153_s21, 0 }
  0x53   : > { %827 = dma.done.wait (%p1159_p8), %s184_s28, 512  }
  0x54   : > { %829 = vsyncadd (%p1159_p8), %s184_s28, 4294966784  ;;  %s592_s25 = sshll.u32 %s1042_s6, 2  ;;  %s193_s5 = scalar_lea.sflag [#allocation11], %s1042_s6 }
  0x55   : > { %s196_s15 = scalar_lea.vmem [#allocation10], %s592_s25 }
  0x56   : > { %831 = dma.done.wait (%p1159_p8), %s193_s5, 64  }
  0x57   : > { %833 = vsyncadd (%p1159_p8), %s193_s5, 4294967232  ;;  %v234_v0 = vld [vmem:[%s187_s29] sm:$0xff]  ;;  %v235_v1 = vld [vmem:[%s187_s29 + $0x8] sm:$0xff]  ;;  %v868_v31 = vmov 0.0   ;;  %vm306_vm4 = vcmask 130048   ;;  %vm228_vm5 = vcmask 0  }
  0x58   : > { %v594_v2 = vld [vmem:[%s187_s29 + $0x10] sm:$0xff]  ;;  %v595_v3 = vld [vmem:[%s187_s29 + $0x18] sm:$0xff]  ;;  %v614_v15 = vld [vmem:[%s196_s15] sm:$0xf]   ;;  %229 = vst.msk [vmem:[#allocation2] sm:$0x1] %vm228_vm5, %v868_v31 }
  0x59   : > { %v255_v4 = vsub.f32 %v594_v2, %v234_v0  ;;  %v1056_v5 = vsub.f32 %v595_v3, %v235_v1  ;;  %v615_v17 = vunpack.c.0.s8 %v614_v15  ;;  %v616_v18 = vunpack.c.1.s8 %v614_v15  ;;  %230 = vst.msk [vmem:[#allocation3] sm:$0x1] %vm228_vm5, %v868_v31  ;;  %231 = vst.msk [vmem:[#allocation4] sm:$0x1] %vm228_vm5, %v868_v31  ;;  %s593_s7 = sshll.u32 %s1042_s6, 3  ;;  %s608_s8 = sshll.u32 %s852_s12, 7 }
  0x5a   : > { %232 = vst.msk [vmem:[#allocation5] sm:$0x1] %vm228_vm5, %v868_v31  ;;  %233 = vst.msk [vmem:[#allocation6] sm:$0x1] %vm228_vm5, %v868_v31  ;;  %s221_s16 = scalar_lea.vmem [#allocation12], %s593_s7  ;;  %s1098_s27 = scalar_lea.hbm %s1149_s2, %s608_s8 }
  0x5b   : > { %v257_v6 = vand.u32 2147483647, %v255_v4  ;;  %v258_v7 = vand.u32 2147483647, %v1056_v5  ;;  %v243_v19 = vand.u32 255, %v615_v17  ;;  %v244_v20 = vand.u32 255, %v616_v18 }
  0x5c   : > { %v283_v26 = vmax.f32 %v255_v4, 0.0  ;;  %v284_v29 = vmax.f32 %v1056_v5, 0.0  ;;  %vm275_vm2 = vcmp.ge.f32.partialorder %v255_v4, 0.0  ;;  %vm276_vm3 = vcmp.ge.f32.partialorder %v1056_v5, 0.0  ;;  %s473_s18 = sshll.u32 %s221_s16, 4  ;;  %s460_s28 = scalar_lea.sflag [#allocation9], %s1042_s6  ;;  %s1100_s18 = int_to_ptr.vmem [resolvable:$true] %s473_s18 }
  0x5d   : > { %v259_v8 = vsub.f32 0.0, %v257_v6  ;;  %v260_v9 = vsub.f32 0.0, %v258_v7  ;;  %vm245_vm0 = vcmp.ne.s32.totalorder %v243_v19, 255  ;;  %v598_v22 = vcvt.s32.f32 %v243_v19  ;;  %s774_s29 = scalar_lea.vmem %s1100_s18, 128  ;;  %p1160_p3 = scmp.ne.s32.totalorder %s1154_s22, 0 }
  0x5e   : > { %vm246_vm1 = vcmp.ne.s32.totalorder %v244_v20, 255  ;;  %v600_v25 = vcvt.s32.f32 %v244_v20  ;;  %v596_v32 = vsel %vm245_vm0, 1.0, %v868_v31  ;;  %v869_v17 = vmov 0   ;;  %p775_p0 = scmp.ne.s32.totalorder %s1100_s18, %s774_s29  ;;  %s870_s12 = smov [#allocation12]  }
  0x5f   : > { %v261_v10 = vmul.f32 1.442695, %v259_v8  ;;  %v263_v11 = vmul.f32 1.442695, %v260_v9  ;;  %v597_v35 = vsel %vm246_vm1, 1.0, %v868_v31  ;;  %v599_v37 = vsel %vm245_vm0, %v598_v22, 0.0  ;;  %700 = vset.pattern.permute.xlu1 %v869_v17  ;;  %701 = vset.pattern.permute.xlu0 %v869_v17 }
  0x60   : > { %v601_v40 = vsel %vm246_vm1, %v600_v25, 0.0  ;;  %v297_v42 = vsub.f32 %v596_v32, %v599_v37  ;;  %v324_v63 = vsel %vm306_vm4, %v599_v37, 0.0  ;;  %v358_v9 = vsel %vm306_vm4, %v596_v32, 0.0  ;;  %p776_p11 = pnand %p775_p0, %p1160_p3  ;;  %s778_s25 = sshll.u32 %s870_s12, 4  ;;  %s779_s25 = int_to_ptr.vmem [resolvable:$false] %s778_s25 }
  0x61   : > { %702 = vpow2.f32 %v261_v10  ;;  %v298_v45 = vsub.f32 %v597_v35, %v601_v40  ;;  %v325_v3 = vsel %vm306_vm4, %v601_v40, 0.0  ;;  %v359_v10 = vsel %vm306_vm4, %v597_v35, 0.0  ;;  %s780_s5 = scalar_lea.vmem %s779_s25, 256  ;;  %p781_p7 = scmp.lt.s32.totalorder %s1100_s18, %s779_s25 }
  0x62   : > { %704 = vpow2.f32 %v263_v11  ;;  %v360_v15 = vadd.f32 %v359_v10, %v358_v9  ;;  %v392_v9 = vlaneseq  ;;  %p777_p13 = pneg %p776_p11  ;;  %p782_p10 = scmp.lt.s32.totalorder %s780_s5, %s774_s29 }
  0x64   : > { %v393_v10 = vand.u32 127, %v392_v9  ;;  %p783_p12 = por %p782_p10, %p781_p7 }
  0x66   : > { %vm394_vm6 = vcmp.eq.s32.totalorder %v393_v10, 0  ;;  %vm406_vm7 = vcmp.eq.s32.totalorder %v393_v10, 1  ;;  %vm419_vm8 = vcmp.eq.s32.totalorder %v393_v10, 2  ;;  %vm432_vm9 = vcmp.eq.s32.totalorder %v393_v10, 3  ;;  %p784_p9 = pnand %p783_p12, %p777_p13 }
  0x67   : > { %vm445_vm10 = vcmp.eq.s32.totalorder %v393_v10, 4 }
  0x6b   : > { %v703_v12 = vpop.eup %702 }
  0x6c   : > { %v705_v13 = vpop.eup %704  ;;  %v265_v14 = vadd.f32 1.0, %v703_v12 }
  0x6d   : > { %v266_v16 = vadd.f32 1.0, %v705_v13 }
  0x6e   : > { %706 = vrcp.f32 %v265_v14 }
  0x6f   : > { %708 = vrcp.f32 %v266_v16 }
  0x70   : > { %710 = vlog2.f32 %v265_v14 }
  0x71   : > { %712 = vlog2.f32 %v266_v16 }
  0x78   : > { %v707_v21 = vpop.eup %706 }
  0x79   : > { %v709_v23 = vpop.eup %708  ;;  %v269_v24 = vmul.f32 %v707_v21, %v265_v14 }
  0x7a   : > { %v711_v27 = vpop.eup %710  ;;  %v270_v28 = vmul.f32 %v709_v23, %v266_v16 }
  0x7b   : > { %v713_v30 = vpop.eup %712  ;;  %v271_v33 = vsub.f32 2.0, %v269_v24  ;;  %v286_v34 = vmul.f32 0.6931472, %v711_v27 }
  0x7c   : > { %v272_v36 = vsub.f32 2.0, %v270_v28  ;;  %v288_v38 = vmul.f32 0.6931472, %v713_v30 }
  0x7d   : > { %v273_v39 = vmul.f32 %v707_v21, %v271_v33  ;;  %v289_v41 = vadd.f32 %v286_v34, %v283_v26 }
  0x7e   : > { %v274_v43 = vmul.f32 %v709_v23, %v272_v36  ;;  %v290_v44 = vadd.f32 %v288_v38, %v284_v29 }
  0x7f   : > { %v277_v46 = vmul.f32 %v703_v12, %v273_v39  ;;  %v291_v47 = vsub.f32 %v289_v41, %v255_v4  ;;  %v299_v48 = vmin.f32 %v289_v41, 100.0  ;;  %v326_v12 = vadd.f32 %v325_v3, %v324_v63 }
  0x80   : > { %v278_v49 = vmul.f32 %v705_v13, %v274_v43  ;;  %v292_v50 = vsub.f32 %v290_v44, %v1056_v5  ;;  %v300_v51 = vmin.f32 %v290_v44, 100.0 }
  0x81   : > { %v279_v52 = vsel %vm275_vm2, %v273_v39, %v277_v46  ;;  %v293_v53 = vmin.f32 %v291_v47, 100.0  ;;  %v301_v54 = vmul.f32 %v299_v48, %v297_v42 }
  0x82   : > { %v280_v55 = vsel %vm276_vm3, %v274_v43, %v278_v49  ;;  %v281_v56 = vmul.f32 %v596_v32, %v279_v52  ;;  %v294_v57 = vmin.f32 %v292_v50, 100.0  ;;  %v302_v58 = vmul.f32 %v300_v51, %v298_v45 }
  0x83   : > { %v282_v59 = vmul.f32 %v597_v35, %v280_v55  ;;  %v295_v60 = vmul.f32 %v599_v37, %v293_v53  ;;  %v305_v53 = vld [vmem:[#allocation2] sm:$0x1] }
  0x84   : > { %v307_v61 = vsel %vm306_vm4, %v281_v56, 0.0  ;;  %v340_v62 = vmul.f32 %v599_v37, %v281_v56  ;;  %v296_v0 = vmul.f32 %v601_v40, %v294_v57  ;;  %v323_v56 = vld [vmem:[#allocation3] sm:$0x1]  ;;  %v339_v57 = vld [vmem:[#allocation4] sm:$0x1] }
  0x85   : > { %v308_v1 = vsel %vm306_vm4, %v282_v59, 0.0  ;;  %v341_v2 = vmul.f32 %v601_v40, %v282_v59  ;;  %v303_v4 = vadd.f32 %v301_v54, %v295_v60  ;;  %v357_v59 = vld [vmem:[#allocation5] sm:$0x1] }
  0x86   : > { %v309_v5 = vadd.f32 %v308_v1, %v307_v61  ;;  %v342_v6 = vsel %vm306_vm4, %v340_v62, 0.0  ;;  %v304_v7 = vadd.f32 %v302_v58, %v296_v0  ;;  %v373_v0 = vld [vmem:[#allocation6] sm:$0x1] }
  0x87   : > { %v343_v8 = vsel %vm306_vm4, %v341_v2, 0.0  ;;  %v374_v13 = vsel %vm306_vm4, %v303_v4, 0.0 }
  0x88   : > { %310 = vadd.xlane.f32.xlu0 %v309_v5  ;;  %v344_v11 = vadd.f32 %v343_v8, %v342_v6  ;;  %v375_v14 = vsel %vm306_vm4, %v304_v7, 0.0 }
  0x89   : > { %v376_v16 = vadd.f32 %v375_v14, %v374_v13 }
  0x8a   : > { %345 = vadd.xlane.f32.xlu1 %v344_v11 }
  0x8c   : > { %327 = vadd.xlane.f32.xlu0 %v326_v12 }
  0x8e   : > { %361 = vadd.xlane.f32.xlu1 %v360_v15 }
  0x90   : > { %377 = vadd.xlane.f32.xlu0 %v376_v16 }
 0x115   : > { %v311_v18 = vpop.xlane.xlu0 %310 }
 0x116   : > { %v312_v19 = vrot.slane %v311_v18, 4 }
 0x117   : > { %v346_v20 = vpop.xlane.xlu1 %345 }
 0x118   : > { %v313_v21 = vadd.f32 %v312_v19, %v311_v18  ;;  %v347_v22 = vrot.slane %v346_v20, 4 }
 0x119   : > { %v328_v23 = vpop.xlane.xlu0 %327 }
 0x11a   : > { %v314_v24 = vrot.slane %v313_v21, 2  ;;  %v348_v25 = vadd.f32 %v347_v22, %v346_v20  ;;  %v329_v26 = vrot.slane %v328_v23, 4 }
 0x11b   : > { %v362_v27 = vpop.xlane.xlu1 %361 }
 0x11c   : > { %v349_v28 = vrot.slane %v348_v25, 2  ;;  %v330_v29 = vadd.f32 %v329_v26, %v328_v23  ;;  %v363_v30 = vrot.slane %v362_v27, 4  ;;  %v315_v32 = vadd.f32 %v314_v24, %v313_v21 }
 0x11d   : > { %v378_v33 = vpop.xlane.xlu0 %377 }
 0x11e   : > { %v331_v34 = vrot.slane %v330_v29, 2  ;;  %v364_v31 = vadd.f32 %v363_v30, %v362_v27  ;;  %v379_v35 = vrot.slane %v378_v33, 4  ;;  %v316_v36 = vrot.slane %v315_v32, 1 }
 0x11f   : > { %v350_v37 = vadd.f32 %v349_v28, %v348_v25 }
 0x120   : > { %v365_v38 = vrot.slane %v364_v31, 2  ;;  %v380_v39 = vadd.f32 %v379_v35, %v378_v33  ;;  %v317_v40 = vadd.f32 %v316_v36, %v315_v32  ;;  %v332_v41 = vadd.f32 %v331_v34, %v330_v29 }
 0x121   : > { %v351_v42 = vrot.slane %v350_v37, 1 }
 0x122   : > { %v381_v43 = vrot.slane %v380_v39, 2  ;;  %617 = vpush %v317_v40  ;;  %v333_v44 = vrot.slane %v332_v41, 1  ;;  %v366_v45 = vadd.f32 %v365_v38, %v364_v31 }
 0x123   : > { %v352_v49 = vadd.f32 %v351_v42, %v350_v37 }
 0x124   : > { %v334_v46 = vadd.f32 %v333_v44, %v332_v41  ;;  %v367_v47 = vrot.slane %v366_v45, 1  ;;  %v382_v48 = vadd.f32 %v381_v43, %v380_v39 }
 0x126   : > { %619 = vpush %v334_v46  ;;  %v368_v50 = vadd.f32 %v367_v47, %v366_v45  ;;  %v383_v51 = vrot.slane %v382_v48, 1 }
 0x127   : > { %621 = vpush %v352_v49 }
 0x128   : > { %623 = vpush %v368_v50  ;;  %v384_v52 = vadd.f32 %v383_v51, %v382_v48 }
 0x12a   : > { %625 = vpush %v384_v52 }
 0x153   : > { %s618_s21 = spop %617 }
 0x154   : > { %v319_v54 = vstv %s618_s21 }
 0x155   : > { %v320_v55 = vadd.f32 %v319_v54, %v305_v53 }
 0x157   : > { %322 = vst.msk [vmem:[#allocation2] sm:$0x1] %vm228_vm5, %v320_v55  ;;  %s620_s19 = spop %619 }
 0x158   : > { %v336_v58 = vstv %s620_s19  ;;  %s622_s26 = spop %621 }
 0x159   : > { %v337_v60 = vadd.f32 %v336_v58, %v323_v56  ;;  %v354_v61 = vstv %s622_s26  ;;  %s624_s30 = spop %623 }
 0x15a   : > { %v355_v62 = vadd.f32 %v354_v61, %v339_v57  ;;  %v370_v63 = vstv %s624_s30 }
 0x15b   : > { %338 = vst.msk [vmem:[#allocation3] sm:$0x1] %vm228_vm5, %v337_v60  ;;  %v371_v1 = vadd.f32 %v370_v63, %v357_v59  ;;  %s626_s3 = spop %625 }
 0x15c   : > { %356 = vst.msk [vmem:[#allocation4] sm:$0x1] %vm228_vm5, %v355_v62  ;;  %v386_v2 = vstv %s626_s3 }
 0x15d   : > { %372 = vst.msk [vmem:[#allocation5] sm:$0x1] %vm228_vm5, %v371_v1  ;;  %v387_v3 = vadd.f32 %v386_v2, %v373_v0 }
 0x15e   : > { %v602_v4 = vld [vmem:[#allocation2] ss:$0 sm:$0xff] }
 0x15f   : > { %388 = vst.msk [vmem:[#allocation6] sm:$0x1] %vm228_vm5, %v387_v3  ;;  %402 = vperm.xlu1 %700, %v602_v4  }
 0x162   : > { %v603_v5 = vld [vmem:[#allocation3] ss:$0 sm:$0xff] }
 0x163   : > { %414 = vperm.xlu0 %701, %v603_v5   ;;  %v604_v6 = vld [vmem:[#allocation4] ss:$0 sm:$0xff] }
 0x164   : > { %427 = vperm.xlu1 %700, %v604_v6   ;;  %v605_v7 = vld [vmem:[#allocation5] ss:$0 sm:$0xff] }
 0x166   : > { %v606_v8 = vld [vmem:[#allocation6] ss:$0 sm:$0xff] }
 0x168   : > { %440 = vperm.xlu1 %700, %v605_v7  }
 0x16c   : > { %453 = vperm.xlu1 %700, %v606_v8  }
 0x1de   : > { %v403_v11 = vpop.permute.xlu1 %402 }
 0x1df   : > { %v405_v13 = vsel %vm394_vm6, %v403_v11, 0.0 }
 0x1e2   : > { %v415_v12 = vpop.permute.xlu0 %414 }
 0x1e3   : > { %v417_v14 = vsel %vm406_vm7, %v415_v12, 0.0  ;;  %v428_v15 = vpop.permute.xlu1 %427 }
 0x1e4   : > { %v418_v16 = vadd.f32 %v417_v14, %v405_v13  ;;  %v430_v17 = vsel %vm419_vm8, %v428_v15, 0.0 }
 0x1e6   : > { %v431_v18 = vadd.f32 %v430_v17, %v418_v16 }
 0x1e7   : > { %v441_v19 = vpop.permute.xlu1 %440 }
 0x1e8   : > { %v443_v20 = vsel %vm432_vm9, %v441_v19, 0.0 }
 0x1e9   : > { %v444_v21 = vadd.f32 %v443_v20, %v431_v18 }
 0x1eb   : > { %v454_v22 = vpop.permute.xlu1 %453 }
 0x1ec   : > { %v456_v23 = vsel %vm445_vm10, %v454_v22, 0.0 }
 0x1ed   : > { %v457_v24 = vadd.f32 %v456_v23, %v444_v21 }
 0x1ef   : > { %458 = vst [vmem:[%s221_s16] sm:$0xff] %v457_v24 }
 0x1f0   : > { %787 = shalt.err (!%p784_p9)
}
 0x1f1   : > { %s788_s6 = scalar_lea.hbm %s1098_s27, 128  ;;  %s792_s19 = scalar_lea.hbm %s1149_s2, 256 }
 0x1f2   : > { %p789_p1 = scmp.ne.s32.totalorder %s1098_s27, %s788_s6  ;;  %p793_p5 = scmp.lt.u32.totalorder %s1098_s27, %s1149_s2 }
 0x1f3   : > { %p794_p4 = scmp.lt.u32.totalorder %s792_s19, %s788_s6  ;;  %p796_p0 = scmp.lt.u32.totalorder %s788_s6, %s1098_s27 }
 0x1f4   : > { %p790_p6 = pnand %p789_p1, %p1160_p3 }
 0x1f5   : > { %p795_p8 = por %p794_p4, %p793_p5 }
 0x1f6   : > { %p791_p2 = pneg %p790_p6 }
 0x1f7   : > { %p797_p11 = por %p796_p0, %p795_p8 }
 0x1f9   : > { %p798_p13 = pnand %p797_p11, %p791_p2 }
 0x1fb   : > { %801 = shalt.err (!%p798_p13)
}
 0x1fc   : > { %631 = dma.vmem_to_hbm [thread:$0]  (%p1160_p3), %s1100_s18, 128, %s1098_s27, %s460_s28  }
 0x1fd PF: > { %s485_s3 = sand.u32 1, %s840_s9   ;;  %p1161_p7 = scmp.ne.s32.totalorder %s1155_s24, 0 }
 0x1fe   : > { %p1162_p10 = scmp.ge.s32.totalorder %s860_s14, 2  ;;  %s486_s7 = scalar_lea.sflag [#allocation9], %s485_s3 }
 0x200   : > { %p641_p12 = pnand %p1162_p10, %p1161_p7 }
 0x202   : > { %835 = dma.done.wait (!%p641_p12), %s486_s7, 128  }
 0x203   : > { %837 = vsyncadd (!%p641_p12), %s486_s7, 4294967168  ;;  %s21_s14 = sadd.s32 1, %s860_s14   ;;  %s1163_s9 = smov %s844_s10 }
 0x204   : > { %p18_p9 = scmp.ge.s32.totalorder %s21_s14, 4   ;;  %s1164_s10 = smov %s848_s11 }
 0x205   : > { %s1165_s11 = smov %s942_s23  ;;  %s1166_s12 = smov %s856_s13 }
 0x206   : > { %s1167_s13 = smov %s1169_s17  ;;  %20 = sbr.rel (!%p18_p9) target bundleno = 8 (0x8), region = 95 }
 0x20d   :  { %491 = vsyncpa [#allocation8], 1 }
 0x20e   :  { %493 = vsyncpa [#allocation8 + $0x1], 1 }
 0x20f   :  { %494 = vsyncpa [#allocation11], 1 }
 0x210   :  { %496 = vsyncpa [#allocation11 + $0x1], 1 }
 0x211   :  { %497 = vsyncpa [#allocation9], 1 }
 0x212   :  { %499 = vsyncpa [#allocation9 + $0x1], 1 }

</bundles_post_ra>
